<compile_context>
chip_gen: v7x
topology: tpu7x:2x2x1
jax: 0.10.0
libtpu: 0.0.40
codegen_flags: <defaults>
</compile_context>

<pallas_src>
import jax
import jax.numpy as jnp
import numpy as np
from jax.experimental import pallas as pl
from jax.experimental.pallas import tpu as pltpu


def _make_basic_block_kernel(B, H, WCin, WCout):
    """Fused BasicBlock kernel for one batch chunk of B images (B*H rows/step)."""

    def kernel(x_ref, w1_ref, b1_ref, w2_ref, b2_ref, o_ref, xcat_ref):
        # x_ref   : (B*H, WCin)       flattened NHWC input rows (lane dense)
        # w1_ref  : (3*WCin, WCout)   conv1 banded weights (BN1 folded), kh taps on K
        # b1_ref  : (1, WCout)        BN1 shift tiled over w positions (f32)
        # w2_ref  : (3*WCout, WCout)  conv2 banded weights (BN2 folded)
        # b2_ref  : (1, WCout)        BN2 shift (f32)
        # o_ref   : (B*H, WCout)
        # xcat_ref: (B*H, 3*WCin)     scratch: 3 row-shifted tap copies, lane-concat
        cdt = xcat_ref.dtype
        zrow = jnp.zeros((1, WCin), cdt)           # hoisted; reused for all pads

        def build_taps(act):
            # act: (B*H, WCin) value in compute dtype.  For each image, place the
            # three vertical taps side by side on the lane axis; the first/last
            # image row of the kh=0/kh=2 slabs is the vertical zero padding.
            for n in range(B):
                r0 = n * H
                xcat_ref[r0:r0 + 1, 0:WCin] = zrow                               # top pad (kh=0)
                xcat_ref[r0 + H - 1:r0 + H, 2 * WCin:3 * WCin] = zrow            # bottom pad (kh=2)
                xcat_ref[r0 + 1:r0 + H, 0:WCin] = act[r0:r0 + H - 1]             # kh = 0 (row above)
                xcat_ref[r0:r0 + H, WCin:2 * WCin] = act[r0:r0 + H]              # kh = 1 (same row)
                xcat_ref[r0:r0 + H - 1, 2 * WCin:3 * WCin] = act[r0 + 1:r0 + H]  # kh = 2 (row below)

        x = x_ref[...]                                             # (B*H, WCin), compute dtype

        # ---- conv1 + bn1 + relu : ONE MXU matmul with K = 3*WCin -------------
        build_taps(x)
        h1 = jnp.dot(xcat_ref[...], w1_ref[...],
                     preferred_element_type=jnp.float32) + b1_ref[...]
        y1 = jnp.maximum(h1, 0.0)                                  # (B*H, WCout) f32

        # ---- conv2 + bn2 + residual + relu (intermediate stays on-chip) ------
        build_taps(y1.astype(cdt))
        h2 = (jnp.dot(xcat_ref[...], w2_ref[...],
                      preferred_element_type=jnp.float32)
              + b2_ref[...] + x.astype(jnp.float32))
        o_ref[...] = jnp.maximum(h2, 0.0).astype(o_ref.dtype)

    return kernel


def _fold_bn(gamma, beta, mean, var, eps=1e-5):
    scale = gamma / jnp.sqrt(var + eps)
    shift = beta - mean * scale
    return scale, shift


def _banded_conv_weights(w_oihw, bn_scale, W):
    """PyTorch (Cout, Cin, 3, 3) conv weight -> (3, W*Cin, W*Cout) banded matrices.

    wb[kh, p*Cin+ci, q*Cout+co] = w[co, ci, kh, kw] * bn_scale[co] with
    p = q + kw - 1 (out-of-range taps absent => implicit horizontal zero pad).
    """
    Cout, Cin, _, _ = w_oihw.shape
    w = jnp.transpose(w_oihw, (2, 3, 1, 0)).astype(jnp.float32)        # (kh, kw, Cin, Cout)
    w = w * bn_scale.astype(jnp.float32)[None, None, None, :]
    q = np.arange(W)
    band = (q[None, None, :] == q[None, :, None] + np.arange(3)[:, None, None] - 1)
    S = jnp.asarray(band.astype(np.float32))                           # (kw, q, p)
    wb = jnp.einsum("kqp,hkio->hpiqo", S, w)                           # (kh, p, Cin, q, Cout)
    return wb.reshape(3, W * Cin, W * Cout)


def basic_block_forward(x_nchw, params, eps=1e-5,
                        compute_dtype=jnp.float32, max_block_n=8):
    """BasicBlock.forward with stride=1, downsample=None (module defaults).
    x_nchw: (N, Cin, H, W) -> (N, planes, H, W)."""
    N, Cin, H, W = x_nchw.shape
    Cout = params["w1"].shape[0]
    assert Cin == Cout, "default BasicBlock (stride=1, no downsample) needs inplanes == planes"
    WCin, WCout = W * Cin, W * Cout

    s1, sh1 = _fold_bn(params["bn1_gamma"], params["bn1_beta"],
                       params["bn1_mean"], params["bn1_var"], eps)
    s2, sh2 = _fold_bn(params["bn2_gamma"], params["bn2_beta"],
                       params["bn2_mean"], params["bn2_var"], eps)

    # kh taps concatenated along K -> one long-K matmul per conv.
    w1cat = _banded_conv_weights(params["w1"], s1, W).reshape(3 * WCin, WCout).astype(compute_dtype)
    w2cat = _banded_conv_weights(params["w2"], s2, W).reshape(3 * WCout, WCout).astype(compute_dtype)
    b1t = jnp.tile(sh1.astype(jnp.float32), W)[None, :]          # (1, WCout) f32
    b2t = jnp.tile(sh2.astype(jnp.float32), W)[None, :]

    # NCHW -> (N*H, W*C): channels on the fastest (lane) axis, lane-dense I/O.
    x2d = jnp.transpose(x_nchw, (0, 2, 3, 1)).reshape(N * H, WCin).astype(compute_dtype)

    # Batch-chunk size: largest divisor of N that is <= max_block_n.
    B = 1
    for d in range(min(N, max_block_n), 0, -1):
        if N % d == 0:
            B = d
            break

    # Actual MXU MACs of the banded matmuls (2 convs), and bytes actually moved.
    flops = 2 * 2 * (N * H) * (3 * WCin) * WCout
    itemsize = jnp.dtype(compute_dtype).itemsize
    bytes_accessed = (x2d.size * itemsize
                      + N * H * WCout * jnp.dtype(x_nchw.dtype).itemsize
                      + (w1cat.size + w2cat.size) * itemsize
                      + (b1t.size + b2t.size) * 4)

    out2d = pl.pallas_call(
        _make_basic_block_kernel(B, H, WCin, WCout),
        out_shape=jax.ShapeDtypeStruct((N * H, WCout), x_nchw.dtype),
        grid_spec=pltpu.PrefetchScalarGridSpec(
            num_scalar_prefetch=0,
            grid=(N // B,),
            in_specs=[
                pl.BlockSpec((B * H, WCin), lambda i: (i, 0)),
                # Grid-invariant weights/biases: constant index_map => DMA'd once.
                pl.BlockSpec((3 * WCin, WCout), lambda i: (0, 0)),
                pl.BlockSpec((1, WCout), lambda i: (0, 0)),
                pl.BlockSpec((3 * WCout, WCout), lambda i: (0, 0)),
                pl.BlockSpec((1, WCout), lambda i: (0, 0)),
            ],
            out_specs=pl.BlockSpec((B * H, WCout), lambda i: (i, 0)),
            scratch_shapes=[pltpu.VMEM((B * H, 3 * WCin), compute_dtype)],
        ),
        compiler_params=pltpu.CompilerParams(dimension_semantics=("parallel",)),
        cost_estimate=pl.CostEstimate(flops=int(flops), transcendentals=0,
                                      bytes_accessed=int(bytes_accessed)),
    )(x2d, w1cat, b1t, w2cat, b2t)

    return jnp.transpose(out2d.reshape(N, H, W, Cout), (0, 3, 1, 2))   # -> NCHW


def _reference_forward(x_nchw, params, eps=1e-5):
    """Pure-JAX reference (lax conv) for correctness checking."""
    def conv(x, w):
        return jax.lax.conv_general_dilated(
            x, w, window_strides=(1, 1), padding=((1, 1), (1, 1)),
            dimension_numbers=("NCHW", "OIHW", "NCHW"))

    def bn(x, g, b, m, v):
        return (x - m[None, :, None, None]) / jnp.sqrt(v + eps)[None, :, None, None] \
               * g[None, :, None, None] + b[None, :, None, None]

    out = jax.nn.relu(bn(conv(x_nchw, params["w1"]), params["bn1_gamma"],
                         params["bn1_beta"], params["bn1_mean"], params["bn1_var"]))
    out = bn(conv(out, params["w2"]), params["bn2_gamma"],
             params["bn2_beta"], params["bn2_mean"], params["bn2_var"])
    return jax.nn.relu(out + x_nchw)


if __name__ == "__main__":
    # Small deterministic config: inplanes = planes = 8, 16x16 spatial, batch 2
    # (W*C = 128 -> fully lane-dense I/O; B*H = 32 MXU rows per grid step).
    N, C, H, W = 2, 8, 16, 16
    planes = 8

    key = jax.random.PRNGKey(0)
    k = jax.random.split(key, 8)

    fan_in = C * 3 * 3
    params = {
        "w1": jax.random.normal(k[0], (planes, C, 3, 3), jnp.float32) * (2.0 / fan_in) ** 0.5,
        "w2": jax.random.normal(k[1], (planes, planes, 3, 3), jnp.float32) * (2.0 / (planes * 9)) ** 0.5,
        "bn1_gamma": 1.0 + 0.1 * jax.random.normal(k[2], (planes,), jnp.float32),
        "bn1_beta": 0.1 * jax.random.normal(k[3], (planes,), jnp.float32),
        "bn1_mean": 0.05 * jax.random.normal(k[4], (planes,), jnp.float32),
        "bn1_var": jnp.abs(1.0 + 0.1 * jax.random.normal(k[5], (planes,), jnp.float32)),
        "bn2_gamma": 1.0 + 0.1 * jax.random.normal(k[6], (planes,), jnp.float32),
        "bn2_beta": 0.1 * jax.random.normal(k[7], (planes,), jnp.float32),
        "bn2_mean": jnp.zeros((planes,), jnp.float32),
        "bn2_var": jnp.ones((planes,), jnp.float32),
    }

    x = jax.random.normal(jax.random.PRNGKey(42), (N, C, H, W), jnp.float32)

    ref = jax.block_until_ready(_reference_forward(x, params))

    # Strict correctness check on the f32 MXU path.
    out_f32 = jax.block_until_ready(basic_block_forward(x, params))
    assert out_f32.shape == (N, planes, H, W)
    assert np.allclose(np.asarray(out_f32), np.asarray(ref), atol=1e-4, rtol=1e-4), \
        "Pallas BasicBlock (f32) output mismatch vs reference"

    # bf16 MXU perf path: f32 accumulation/bias/residual, loose smoke-test tolerance.
    out_bf16 = jax.block_until_ready(
        basic_block_forward(x, params, compute_dtype=jnp.bfloat16))
    assert np.allclose(np.asarray(out_bf16), np.asarray(ref), atol=2.5e-1, rtol=5e-2), \
        "Pallas BasicBlock (bf16) output mismatch vs reference (loose tolerance)"

    print("KERNEL_OK")
</pallas_src>

<mosaic_0001>
module attributes {stable_mosaic.version = 11 : i64} {
  func.func @kernel(%arg0: i32, %arg1: memref<32x128xf32, #tpu.memory_space<vmem>>, %arg2: memref<384x128xf32, #tpu.memory_space<vmem>>, %arg3: memref<1x128xf32, #tpu.memory_space<vmem>>, %arg4: memref<384x128xf32, #tpu.memory_space<vmem>>, %arg5: memref<1x128xf32, #tpu.memory_space<vmem>>, %arg6: memref<32x128xf32, #tpu.memory_space<vmem>>, %arg7: memref<32x384xf32, #tpu.memory_space<vmem>>) attributes {dimension_semantics = [#tpu.dimension_semantics<parallel>], iteration_bounds = array<i64: 1>, scalar_prefetch = 0 : i64, scratch_operands = 1 : i64, tpu.core_type = #tpu.core_type<tc>, window_params = [{transform_indices = @transform_0, window_bounds = array<i64: 32, 128>}, {pipeline_mode = #tpu.pipeline_mode<synchronous>, transform_indices = @transform_1, window_bounds = array<i64: 384, 128>}, {pipeline_mode = #tpu.pipeline_mode<synchronous>, transform_indices = @transform_2, window_bounds = array<i64: 1, 128>}, {pipeline_mode = #tpu.pipeline_mode<synchronous>, transform_indices = @transform_3, window_bounds = array<i64: 384, 128>}, {pipeline_mode = #tpu.pipeline_mode<synchronous>, transform_indices = @transform_4, window_bounds = array<i64: 1, 128>}, {transform_indices = @transform_5, window_bounds = array<i64: 32, 128>}]} {
    %cst = arith.constant 0.000000e+00 : f32
    %0 = vector.broadcast %cst : f32 to vector<1x128xf32>
    %c0 = arith.constant 0 : index
    %c0_0 = arith.constant 0 : index
    %1 = vector.load %arg1[%c0, %c0_0] : memref<32x128xf32, #tpu.memory_space<vmem>>, vector<32x128xf32>
    %c0_1 = arith.constant 0 : index
    %c0_2 = arith.constant 0 : index
    %2 = vector.load %arg7[%c0_1, %c0_2] : memref<32x384xf32, #tpu.memory_space<vmem>>, vector<1x128xf32>
    tpu.vector_store %arg7[%c0_1, %c0_2], %0 {strides = array<i32>} : memref<32x384xf32, #tpu.memory_space<vmem>>, vector<1x128xf32>,
    %c15 = arith.constant 15 : index
    %c256 = arith.constant 256 : index
    %3 = vector.load %arg7[%c15, %c256] : memref<32x384xf32, #tpu.memory_space<vmem>>, vector<1x128xf32>
    tpu.vector_store %arg7[%c15, %c256], %0 {strides = array<i32>} : memref<32x384xf32, #tpu.memory_space<vmem>>, vector<1x128xf32>,
    %4 = vector.extract_strided_slice %1 {offsets = [0, 0], sizes = [15, 128], strides = [1, 1]} : vector<32x128xf32> to vector<15x128xf32>
    %c1 = arith.constant 1 : index
    %c0_3 = arith.constant 0 : index
    %5 = vector.load %arg7[%c1, %c0_3] : memref<32x384xf32, #tpu.memory_space<vmem>>, vector<15x128xf32>
    tpu.vector_store %arg7[%c1, %c0_3], %4 {strides = array<i32>} : memref<32x384xf32, #tpu.memory_space<vmem>>, vector<15x128xf32>,
    %6 = vector.extract_strided_slice %1 {offsets = [0, 0], sizes = [16, 128], strides = [1, 1]} : vector<32x128xf32> to vector<16x128xf32>
    %c0_4 = arith.constant 0 : index
    %c128 = arith.constant 128 : index
    %7 = vector.load %arg7[%c0_4, %c128] : memref<32x384xf32, #tpu.memory_space<vmem>>, vector<16x128xf32>
    tpu.vector_store %arg7[%c0_4, %c128], %6 {strides = array<i32>} : memref<32x384xf32, #tpu.memory_space<vmem>>, vector<16x128xf32>,
    %8 = vector.extract_strided_slice %1 {offsets = [1, 0], sizes = [15, 128], strides = [1, 1]} : vector<32x128xf32> to vector<15x128xf32>
    %c0_5 = arith.constant 0 : index
    %c256_6 = arith.constant 256 : index
    %9 = vector.load %arg7[%c0_5, %c256_6] : memref<32x384xf32, #tpu.memory_space<vmem>>, vector<15x128xf32>
    tpu.vector_store %arg7[%c0_5, %c256_6], %8 {strides = array<i32>} : memref<32x384xf32, #tpu.memory_space<vmem>>, vector<15x128xf32>,
    %c16 = arith.constant 16 : index
    %c0_7 = arith.constant 0 : index
    %10 = vector.load %arg7[%c16, %c0_7] : memref<32x384xf32, #tpu.memory_space<vmem>>, vector<1x128xf32>
    tpu.vector_store %arg7[%c16, %c0_7], %0 {strides = array<i32>} : memref<32x384xf32, #tpu.memory_space<vmem>>, vector<1x128xf32>,
    %c31 = arith.constant 31 : index
    %c256_8 = arith.constant 256 : index
    %11 = vector.load %arg7[%c31, %c256_8] : memref<32x384xf32, #tpu.memory_space<vmem>>, vector<1x128xf32>
    tpu.vector_store %arg7[%c31, %c256_8], %0 {strides = array<i32>} : memref<32x384xf32, #tpu.memory_space<vmem>>, vector<1x128xf32>,
    %12 = vector.extract_strided_slice %1 {offsets = [16, 0], sizes = [15, 128], strides = [1, 1]} : vector<32x128xf32> to vector<15x128xf32>
    %c17 = arith.constant 17 : index
    %c0_9 = arith.constant 0 : index
    %13 = vector.load %arg7[%c17, %c0_9] : memref<32x384xf32, #tpu.memory_space<vmem>>, vector<15x128xf32>
    tpu.vector_store %arg7[%c17, %c0_9], %12 {strides = array<i32>} : memref<32x384xf32, #tpu.memory_space<vmem>>, vector<15x128xf32>,
    %14 = vector.extract_strided_slice %1 {offsets = [16, 0], sizes = [16, 128], strides = [1, 1]} : vector<32x128xf32> to vector<16x128xf32>
    %c16_10 = arith.constant 16 : index
    %c128_11 = arith.constant 128 : index
    %15 = vector.load %arg7[%c16_10, %c128_11] : memref<32x384xf32, #tpu.memory_space<vmem>>, vector<16x128xf32>
    tpu.vector_store %arg7[%c16_10, %c128_11], %14 {strides = array<i32>} : memref<32x384xf32, #tpu.memory_space<vmem>>, vector<16x128xf32>,
    %16 = vector.extract_strided_slice %1 {offsets = [17, 0], sizes = [15, 128], strides = [1, 1]} : vector<32x128xf32> to vector<15x128xf32>
    %c16_12 = arith.constant 16 : index
    %c256_13 = arith.constant 256 : index
    %17 = vector.load %arg7[%c16_12, %c256_13] : memref<32x384xf32, #tpu.memory_space<vmem>>, vector<15x128xf32>
    tpu.vector_store %arg7[%c16_12, %c256_13], %16 {strides = array<i32>} : memref<32x384xf32, #tpu.memory_space<vmem>>, vector<15x128xf32>,
    %c0_14 = arith.constant 0 : index
    %c0_15 = arith.constant 0 : index
    %18 = vector.load %arg7[%c0_14, %c0_15] : memref<32x384xf32, #tpu.memory_space<vmem>>, vector<32x384xf32>
    %c0_16 = arith.constant 0 : index
    %c0_17 = arith.constant 0 : index
    %19 = vector.load %arg2[%c0_16, %c0_17] : memref<384x128xf32, #tpu.memory_space<vmem>>, vector<384x128xf32>
    %cst_18 = arith.constant dense<0.000000e+00> : vector<32x128xf32>
    %20 = tpu.matmul %18, %19, %cst_18 {dimension_numbers = #tpu.dot_dimension_numbers<[1], [0], [0], [1], [0, 0, 1, 1], [], []>} : vector<32x384xf32>, vector<384x128xf32>, vector<32x128xf32> -> vector<32x128xf32>
    %c0_19 = arith.constant 0 : index
    %c0_20 = arith.constant 0 : index
    %21 = vector.load %arg3[%c0_19, %c0_20] : memref<1x128xf32, #tpu.memory_space<vmem>>, vector<1x128xf32>
    %22 = vector.broadcast %21 : vector<1x128xf32> to vector<32x128xf32>
    %23 = arith.addf %20, %22 : vector<32x128xf32>
    %cst_21 = arith.constant 0.000000e+00 : f32
    %24 = vector.broadcast %cst_21 : f32 to vector<32x128xf32>
    %25 = arith.maximumf %23, %24 : vector<32x128xf32>
    %c0_22 = arith.constant 0 : index
    %c0_23 = arith.constant 0 : index
    %26 = vector.load %arg7[%c0_22, %c0_23] : memref<32x384xf32, #tpu.memory_space<vmem>>, vector<1x128xf32>
    tpu.vector_store %arg7[%c0_22, %c0_23], %0 {strides = array<i32>} : memref<32x384xf32, #tpu.memory_space<vmem>>, vector<1x128xf32>,
    %c15_24 = arith.constant 15 : index
    %c256_25 = arith.constant 256 : index
    %27 = vector.load %arg7[%c15_24, %c256_25] : memref<32x384xf32, #tpu.memory_space<vmem>>, vector<1x128xf32>
    tpu.vector_store %arg7[%c15_24, %c256_25], %0 {strides = array<i32>} : memref<32x384xf32, #tpu.memory_space<vmem>>, vector<1x128xf32>,
    %28 = vector.extract_strided_slice %25 {offsets = [0, 0], sizes = [15, 128], strides = [1, 1]} : vector<32x128xf32> to vector<15x128xf32>
    %c1_26 = arith.constant 1 : index
    %c0_27 = arith.constant 0 : index
    %29 = vector.load %arg7[%c1_26, %c0_27] : memref<32x384xf32, #tpu.memory_space<vmem>>, vector<15x128xf32>
    tpu.vector_store %arg7[%c1_26, %c0_27], %28 {strides = array<i32>} : memref<32x384xf32, #tpu.memory_space<vmem>>, vector<15x128xf32>,
    %30 = vector.extract_strided_slice %25 {offsets = [0, 0], sizes = [16, 128], strides = [1, 1]} : vector<32x128xf32> to vector<16x128xf32>
    %c0_28 = arith.constant 0 : index
    %c128_29 = arith.constant 128 : index
    %31 = vector.load %arg7[%c0_28, %c128_29] : memref<32x384xf32, #tpu.memory_space<vmem>>, vector<16x128xf32>
    tpu.vector_store %arg7[%c0_28, %c128_29], %30 {strides = array<i32>} : memref<32x384xf32, #tpu.memory_space<vmem>>, vector<16x128xf32>,
    %32 = vector.extract_strided_slice %25 {offsets = [1, 0], sizes = [15, 128], strides = [1, 1]} : vector<32x128xf32> to vector<15x128xf32>
    %c0_30 = arith.constant 0 : index
    %c256_31 = arith.constant 256 : index
    %33 = vector.load %arg7[%c0_30, %c256_31] : memref<32x384xf32, #tpu.memory_space<vmem>>, vector<15x128xf32>
    tpu.vector_store %arg7[%c0_30, %c256_31], %32 {strides = array<i32>} : memref<32x384xf32, #tpu.memory_space<vmem>>, vector<15x128xf32>,
    %c16_32 = arith.constant 16 : index
    %c0_33 = arith.constant 0 : index
    %34 = vector.load %arg7[%c16_32, %c0_33] : memref<32x384xf32, #tpu.memory_space<vmem>>, vector<1x128xf32>
    tpu.vector_store %arg7[%c16_32, %c0_33], %0 {strides = array<i32>} : memref<32x384xf32, #tpu.memory_space<vmem>>, vector<1x128xf32>,
    %c31_34 = arith.constant 31 : index
    %c256_35 = arith.constant 256 : index
    %35 = vector.load %arg7[%c31_34, %c256_35] : memref<32x384xf32, #tpu.memory_space<vmem>>, vector<1x128xf32>
    tpu.vector_store %arg7[%c31_34, %c256_35], %0 {strides = array<i32>} : memref<32x384xf32, #tpu.memory_space<vmem>>, vector<1x128xf32>,
    %36 = vector.extract_strided_slice %25 {offsets = [16, 0], sizes = [15, 128], strides = [1, 1]} : vector<32x128xf32> to vector<15x128xf32>
    %c17_36 = arith.constant 17 : index
    %c0_37 = arith.constant 0 : index
    %37 = vector.load %arg7[%c17_36, %c0_37] : memref<32x384xf32, #tpu.memory_space<vmem>>, vector<15x128xf32>
    tpu.vector_store %arg7[%c17_36, %c0_37], %36 {strides = array<i32>} : memref<32x384xf32, #tpu.memory_space<vmem>>, vector<15x128xf32>,
    %38 = vector.extract_strided_slice %25 {offsets = [16, 0], sizes = [16, 128], strides = [1, 1]} : vector<32x128xf32> to vector<16x128xf32>
    %c16_38 = arith.constant 16 : index
    %c128_39 = arith.constant 128 : index
    %39 = vector.load %arg7[%c16_38, %c128_39] : memref<32x384xf32, #tpu.memory_space<vmem>>, vector<16x128xf32>
    tpu.vector_store %arg7[%c16_38, %c128_39], %38 {strides = array<i32>} : memref<32x384xf32, #tpu.memory_space<vmem>>, vector<16x128xf32>,
    %40 = vector.extract_strided_slice %25 {offsets = [17, 0], sizes = [15, 128], strides = [1, 1]} : vector<32x128xf32> to vector<15x128xf32>
    %c16_40 = arith.constant 16 : index
    %c256_41 = arith.constant 256 : index
    %41 = vector.load %arg7[%c16_40, %c256_41] : memref<32x384xf32, #tpu.memory_space<vmem>>, vector<15x128xf32>
    tpu.vector_store %arg7[%c16_40, %c256_41], %40 {strides = array<i32>} : memref<32x384xf32, #tpu.memory_space<vmem>>, vector<15x128xf32>,
    %c0_42 = arith.constant 0 : index
    %c0_43 = arith.constant 0 : index
    %42 = vector.load %arg7[%c0_42, %c0_43] : memref<32x384xf32, #tpu.memory_space<vmem>>, vector<32x384xf32>
    %c0_44 = arith.constant 0 : index
    %c0_45 = arith.constant 0 : index
    %43 = vector.load %arg4[%c0_44, %c0_45] : memref<384x128xf32, #tpu.memory_space<vmem>>, vector<384x128xf32>
    %cst_46 = arith.constant dense<0.000000e+00> : vector<32x128xf32>
    %44 = tpu.matmul %42, %43, %cst_46 {dimension_numbers = #tpu.dot_dimension_numbers<[1], [0], [0], [1], [0, 0, 1, 1], [], []>} : vector<32x384xf32>, vector<384x128xf32>, vector<32x128xf32> -> vector<32x128xf32>
    %c0_47 = arith.constant 0 : index
    %c0_48 = arith.constant 0 : index
    %45 = vector.load %arg5[%c0_47, %c0_48] : memref<1x128xf32, #tpu.memory_space<vmem>>, vector<1x128xf32>
    %46 = vector.broadcast %45 : vector<1x128xf32> to vector<32x128xf32>
    %47 = arith.addf %44, %46 : vector<32x128xf32>
    %48 = arith.addf %47, %1 : vector<32x128xf32>
    %cst_49 = arith.constant 0.000000e+00 : f32
    %49 = vector.broadcast %cst_49 : f32 to vector<32x128xf32>
    %50 = arith.maximumf %48, %49 : vector<32x128xf32>
    %c0_50 = arith.constant 0 : index
    %c0_51 = arith.constant 0 : index
    %51 = vector.load %arg6[%c0_50, %c0_51] : memref<32x128xf32, #tpu.memory_space<vmem>>, vector<32x128xf32>
    tpu.vector_store %arg6[%c0_50, %c0_51], %50 {strides = array<i32>} : memref<32x128xf32, #tpu.memory_space<vmem>>, vector<32x128xf32>,
    return
  }
  func.func @transform_0(%arg0: i32) -> (i32, i32) {
    %c0_i32 = arith.constant 0 : i32
    %c0_i32_0 = arith.constant 0 : i32
    return %arg0, %c0_i32 : i32, i32
  }
  func.func @transform_1(%arg0: i32) -> (i32, i32) {
    %c0_i32 = arith.constant 0 : i32
    %c0_i32_0 = arith.constant 0 : i32
    %c0_i32_1 = arith.constant 0 : i32
    return %c0_i32, %c0_i32_0 : i32, i32
  }
  func.func @transform_2(%arg0: i32) -> (i32, i32) {
    %c0_i32 = arith.constant 0 : i32
    %c0_i32_0 = arith.constant 0 : i32
    %c0_i32_1 = arith.constant 0 : i32
    return %c0_i32, %c0_i32_0 : i32, i32
  }
  func.func @transform_3(%arg0: i32) -> (i32, i32) {
    %c0_i32 = arith.constant 0 : i32
    %c0_i32_0 = arith.constant 0 : i32
    %c0_i32_1 = arith.constant 0 : i32
    return %c0_i32, %c0_i32_0 : i32, i32
  }
  func.func @transform_4(%arg0: i32) -> (i32, i32) {
    %c0_i32 = arith.constant 0 : i32
    %c0_i32_0 = arith.constant 0 : i32
    %c0_i32_1 = arith.constant 0 : i32
    return %c0_i32, %c0_i32_0 : i32, i32
  }
  func.func @transform_5(%arg0: i32) -> (i32, i32) {
    %c0_i32 = arith.constant 0 : i32
    %c0_i32_0 = arith.constant 0 : i32
    return %arg0, %c0_i32 : i32, i32
  }
}

</mosaic_0001>

<bundles_post_ra>
// kernel: tpu_custom_call.1
= control target key start
LH: loop header
LB: loop body
LE: loop exit
PB: predicated region body
PF: predicated region fallthrough
CT: control target
= control target key end

     0   :  { %10 = vsyncpa [#allocation4], 0  ;;  %s1253_s0 = inlined_call_operand.hbm [shape: f32[32,128], index: 0, kind: input, shape index: {}]   ;;  %s1254_s1 = inlined_call_operand.hbm [shape: f32[384,128], index: 1, kind: input, shape index: {}]   ;;  %s1255_s2 = inlined_call_operand.vmem [shape: f32[1,128], index: 2, kind: input, shape index: {}]   ;;  %s1256_s3 = inlined_call_operand.hbm [shape: f32[384,128], index: 3, kind: input, shape index: {}]   ;;  %s1257_s4 = inlined_call_operand.vmem [shape: f32[1,128], index: 4, kind: input, shape index: {}]   ;;  %s1258_s5 = inlined_call_operand.hbm [shape: f32[32,128], index: 5, kind: output, shape index: {}]  }
   0x1   :  { %11 = vsyncpa [#allocation7], 0 }
   0x2   :  { %12 = vsyncpa [#allocation5], 0  ;;  %s1091_s18 = smov [#allocation6]   ;;  %s1092_s20 = smov [#allocation3]  }
   0x3   :  { %s30_s19 = sshll.u32 %s1091_s18, 4  ;;  %s18_s21 = sshll.u32 %s1092_s20, 4  ;;  %s31_s19 = int_to_ptr.vmem [resolvable:$true] %s30_s19  ;;  %s1128_s21 = int_to_ptr.vmem [resolvable:$true] %s18_s21 }
   0x4   :  { %s997_s24 = scalar_lea.hbm %s1254_s1, 6144 }
   0x5   :  { %p998_p0 = scmp.ne.s32.totalorder %s1254_s1, %s997_s24  ;;  %p1001_p1 = scmp.lt.u32.totalorder %s997_s24, %s1254_s1 }
   0x7   :  { %p1003_p2 = pnand %p1001_p1, %p998_p0 }
   0x9   :  { %1006 = shalt.err (!%p1003_p2)
}
   0xa   :  { %s1007_s29 = scalar_lea.vmem %s31_s19, 6144  ;;  %p1012_p4 = scmp.lt.s32.totalorder %s31_s19, %s31_s19 }
   0xb   :  { %p1008_p3 = scmp.ne.s32.totalorder %s31_s19, %s1007_s29  ;;  %p1013_p5 = scmp.lt.s32.totalorder %s1007_s29, %s1007_s29 }
   0xd   :  { %p1014_p6 = por %p1013_p5, %p1012_p4 }
   0xf   :  { %p1015_p7 = pnand %p1014_p6, %p1008_p3 }
  0x11   :  { %1018 = shalt.err (!%p1015_p7)
}
  0x12   :  { %s1093_s30 = smov 128   ;;  %s1094_s6 = smov 8  }
  0x13   :  { %36 = dma.hbm_to_vmem [thread:$0]  %s1254_s1, 6144, %s31_s19, [#allocation7], %s1093_s30, %s1093_s30, %s1094_s6  }
  0x14   :  { %s1019_s11 = scalar_lea.hbm %s1253_s0, 512 }
  0x15   :  { %p1020_p8 = scmp.ne.s32.totalorder %s1253_s0, %s1019_s11  ;;  %p1023_p9 = scmp.lt.u32.totalorder %s1019_s11, %s1253_s0 }
  0x17   :  { %p1025_p10 = pnand %p1023_p9, %p1020_p8 }
  0x19   :  { %1028 = shalt.err (!%p1025_p10)
}
  0x1a   :  { %s1029_s16 = scalar_lea.vmem %s1128_s21, 512  ;;  %p1034_p12 = scmp.lt.s32.totalorder %s1128_s21, %s1128_s21 }
  0x1b   :  { %p1030_p11 = scmp.ne.s32.totalorder %s1128_s21, %s1029_s16  ;;  %p1035_p13 = scmp.lt.s32.totalorder %s1029_s16, %s1029_s16 }
  0x1d   :  { %p1036_p0 = por %p1035_p13, %p1034_p12 }
  0x1f   :  { %p1037_p1 = pnand %p1036_p0, %p1030_p11 }
  0x21   :  { %1040 = shalt.err (!%p1037_p1)
}
  0x22   :  { %24 = dma.hbm_to_vmem [thread:$0]  %s1253_s0, 512, %s1128_s21, [#allocation4], %s1093_s30, %s1093_s30, %s1094_s6  }
  0x23   :  { %s1095_s18 = smov [#allocation8]   ;;  %s1041_s23 = scalar_lea.hbm %s1256_s3, 6144 }
  0x24   :  { %s44_s19 = sshll.u32 %s1095_s18, 4  ;;  %p1042_p2 = scmp.ne.s32.totalorder %s1256_s3, %s1041_s23  ;;  %s45_s19 = int_to_ptr.vmem [resolvable:$true] %s44_s19 }
  0x25   :  { %p1045_p3 = scmp.lt.u32.totalorder %s1041_s23, %s1256_s3 }
  0x27   :  { %p1047_p4 = pnand %p1045_p3, %p1042_p2 }
  0x29   :  { %1050 = shalt.err (!%p1047_p4)
}
  0x2a   :  { %s1051_s28 = scalar_lea.vmem %s45_s19, 6144  ;;  %p1056_p6 = scmp.lt.s32.totalorder %s45_s19, %s45_s19 }
  0x2b   :  { %p1052_p5 = scmp.ne.s32.totalorder %s45_s19, %s1051_s28  ;;  %p1057_p7 = scmp.lt.s32.totalorder %s1051_s28, %s1051_s28 }
  0x2d   :  { %p1058_p8 = por %p1057_p7, %p1056_p6 }
  0x2f   :  { %p1059_p9 = pnand %p1058_p8, %p1052_p5 }
  0x31   :  { %1062 = shalt.err (!%p1059_p9)
}
  0x32   :  { %50 = dma.hbm_to_vmem [thread:$0]  %s1256_s3, 6144, %s45_s19, [#allocation7], %s1093_s30, %s1093_s30, %s1094_s6  }
  0x33   :  { %1085 = dma.done.wait [#allocation4], 512  }
  0x34   :  { %1086 = vsyncadd [#allocation4], 4294966784 }
  0x35   :  { %1087 = dma.done.wait [#allocation7], 12288  }
  0x36   :  { %1088 = vsyncadd [#allocation7], 4294955008  ;;  %v1096_v0 = vmov 0.0   ;;  %v136_v1 = vld [vmem:[#allocation6 + $0x80] sm:$0xff]  ;;  %v137_v2 = vld [vmem:[#allocation6 + $0x88] sm:$0xff]  ;;  %vm80_vm0 = vcmask 1046528  }
  0x37   :  { %66 = vst [vmem:[#allocation2] sm:$0x1] %v1096_v0  ;;  %67 = vst [vmem:[#allocation2 + $0x2f] sm:$0x1] %v1096_v0  ;;  %v120_v3 = vld [vmem:[#allocation6] sm:$0xff]  ;;  %v862_v4 = vpack.c.bf16 %v137_v2, %v136_v1  ;;  %v121_v5 = vld [vmem:[#allocation6 + $0x8] sm:$0xff] }
  0x38   :  { %88 = vst [vmem:[#allocation2 + $0x30] sm:$0x1] %v1096_v0  ;;  %89 = vst [vmem:[#allocation2 + $0x5f] sm:$0x1] %v1096_v0  ;;  %v138_v6 = vld [vmem:[#allocation6 + $0x90] sm:$0xff]  ;;  %v139_v7 = vld [vmem:[#allocation6 + $0x98] sm:$0xff]  ;;  %v864_v8 = vpack.c.bf16 %v121_v5, %v120_v3 }
  0x39   :  { %v866_v9 = vpack.c.bf16 %v139_v7, %v138_v6  ;;  %v152_v10 = vld [vmem:[#allocation6 + $0x100] sm:$0xff]  ;;  %v153_v11 = vld [vmem:[#allocation6 + $0x108] sm:$0xff]  ;;  %v122_v12 = vld [vmem:[#allocation6 + $0x10] sm:$0xff]  ;;  %863 = vmatprep.subr.bf16.mxu0 %v862_v4  ;;  %vm70_vm1 = vcmask 1040384  }
  0x3a   :  { %v894_v13 = vpack.c.bf16 %v153_v11, %v152_v10  ;;  %v123_v14 = vld [vmem:[#allocation6 + $0x18] sm:$0xff]  ;;  %v140_v15 = vld [vmem:[#allocation6 + $0xa0] sm:$0xff]  ;;  %v141_v16 = vld [vmem:[#allocation6 + $0xa8] sm:$0xff]  ;;  %865 = vmatpush3.bf16.msra.mxu0 %v864_v8 }
  0x3b   :  { %v868_v17 = vpack.c.bf16 %v123_v14, %v122_v12  ;;  %v154_v18 = vld [vmem:[#allocation6 + $0x110] sm:$0xff]  ;;  %v155_v19 = vld [vmem:[#allocation6 + $0x118] sm:$0xff]  ;;  %867 = vmatprep.subr.bf16.mxu0 %v866_v9  ;;  %v870_v20 = vpack.c.bf16 %v141_v16, %v140_v15  ;;  %v124_v22 = vld [vmem:[#allocation6 + $0x20] sm:$0xff] }
  0x3c   :  { %895 = vmatprep.subr.bf16.mxu1 %v894_v13  ;;  %v898_v21 = vpack.c.bf16 %v155_v19, %v154_v18  ;;  %v125_v23 = vld [vmem:[#allocation6 + $0x28] sm:$0xff]  ;;  %v142_v24 = vld [vmem:[#allocation6 + $0xb0] sm:$0xff]  ;;  %v143_v25 = vld [vmem:[#allocation6 + $0xb8] sm:$0xff] }
  0x3d   :  { %897 = vmatpush3.bf16.msra.mxu1 %v894_v13  ;;  %v156_v26 = vld [vmem:[#allocation6 + $0x120] sm:$0xff]  ;;  %v157_v27 = vld [vmem:[#allocation6 + $0x128] sm:$0xff]  ;;  %v872_v29 = vpack.c.bf16 %v125_v23, %v124_v22  ;;  %v158_v30 = vld [vmem:[#allocation6 + $0x130] sm:$0xff]  ;;  %v874_v32 = vpack.c.bf16 %v143_v25, %v142_v24 }
  0x3e   :  { %899 = vmatprep.subr.bf16.mxu1 %v898_v21  ;;  %v902_v28 = vpack.c.bf16 %v157_v27, %v156_v26  ;;  %869 = vmatpush3.bf16.msra.mxu0 %v868_v17  ;;  %v159_v31 = vld [vmem:[#allocation6 + $0x138] sm:$0xff]  ;;  %v126_v33 = vld [vmem:[#allocation6 + $0x30] sm:$0xff]  ;;  %v144_v35 = vld [vmem:[#allocation6 + $0xc0] sm:$0xff] }
  0x3f   :  { %871 = vmatprep.subr.bf16.mxu0 %v870_v20  ;;  %v127_v34 = vld [vmem:[#allocation6 + $0x38] sm:$0xff]  ;;  %v145_v36 = vld [vmem:[#allocation6 + $0xc8] sm:$0xff]  ;;  %v906_v37 = vpack.c.bf16 %v159_v31, %v158_v30  ;;  %v160_v39 = vld [vmem:[#allocation6 + $0x140] sm:$0xff] }
  0x40   :  { %v876_v38 = vpack.c.bf16 %v127_v34, %v126_v33  ;;  %v161_v40 = vld [vmem:[#allocation6 + $0x148] sm:$0xff]  ;;  %v878_v41 = vpack.c.bf16 %v145_v36, %v144_v35  ;;  %v128_v42 = vld [vmem:[#allocation6 + $0x40] sm:$0xff]  ;;  %v146_v44 = vld [vmem:[#allocation6 + $0xd0] sm:$0xff] }
  0x41   :  { %901 = vmatpush3.bf16.msra.mxu1 %v898_v21  ;;  %v129_v43 = vld [vmem:[#allocation6 + $0x48] sm:$0xff]  ;;  %v147_v45 = vld [vmem:[#allocation6 + $0xd8] sm:$0xff]  ;;  %v910_v46 = vpack.c.bf16 %v161_v40, %v160_v39  ;;  %v162_v47 = vld [vmem:[#allocation6 + $0x150] sm:$0xff] }
  0x42   :  { %903 = vmatprep.subr.bf16.mxu1 %v902_v28  ;;  %873 = vmatpush3.bf16.msra.mxu0 %v872_v29  ;;  %v1184_v48 = vld [vmem:[#allocation3] sm:$0xff]  ;;  %v880_v49 = vpack.c.bf16 %v129_v43, %v128_v42  ;;  %v163_v50 = vld [vmem:[#allocation6 + $0x158] sm:$0xff]  ;;  %v1188_v52 = vld [vmem:[#allocation3 + $0x8] sm:$0xff]  ;;  %v882_v55 = vpack.c.bf16 %v147_v45, %v146_v44 }
  0x43   :  { %875 = vmatprep.subr.bf16.mxu0 %v874_v32  ;;  %239 = vmatprep.mubr.f32.mxu0 %v1184_v48  ;;  %v71_v51 = vrot.slane %v1184_v48, 7  ;;  %v81_v53 = vrot.slane %v1184_v48, 1  ;;  %v1191_v54 = vld [vmem:[#allocation3 + $0x10] sm:$0xff]  ;;  %v131_v57 = vld [vmem:[#allocation6 + $0x58] sm:$0xff]  ;;  %v82_v58 = vrot.slane %v1188_v52, 1  ;;  %v148_v61 = vld [vmem:[#allocation6 + $0xe0] sm:$0xff]  ;;  %v914_v1 = vpack.c.bf16 %v163_v50, %v162_v47 }
  0x44   :  { %v130_v56 = vld [vmem:[#allocation6 + $0x50] sm:$0xff]  ;;  %v92_v59 = vrot.slane %v1191_v54, 7  ;;  %v1195_v60 = vld [vmem:[#allocation3 + $0x18] sm:$0xff]  ;;  %v149_v62 = vld [vmem:[#allocation6 + $0xe8] sm:$0xff]  ;;  %v101_v33 = vrot.slane %v1191_v54, 1  ;;  %v72_v35 = vrot.slane %v1188_v52, 7 }
  0x45   :  { %905 = vmatpush3.bf16.msra.mxu1 %v902_v28  ;;  %76 = vst [vmem:[#allocation2] sm:$0xfe] %v71_v51  ;;  %v102_v63 = vrot.slane %v1195_v60, 1  ;;  %v83_v2 = vsel %vm80_vm0, %v81_v53, %v82_v58  ;;  %87 = vst [vmem:[#allocation2 + $0x28] sm:$0x7f] %v82_v58  ;;  %v884_v3 = vpack.c.bf16 %v131_v57, %v130_v56  ;;  %v164_v4 = vld [vmem:[#allocation6 + $0x160] sm:$0xff] }
  0x46   :  { %907 = vmatprep.subr.bf16.mxu1 %v906_v37  ;;  %877 = vmatpush3.bf16.msra.mxu0 %v876_v38  ;;  %97 = vst [vmem:[#allocation2 + $0x30] sm:$0xfe] %v92_v59  ;;  %v165_v5 = vld [vmem:[#allocation6 + $0x168] sm:$0xff]  ;;  %v886_v6 = vpack.c.bf16 %v149_v62, %v148_v61  ;;  %v132_v7 = vld [vmem:[#allocation6 + $0x60] sm:$0xff]  ;;  %v150_v9 = vld [vmem:[#allocation6 + $0xf0] sm:$0xff]  ;;  %v73_v45 = vsel %vm70_vm1, %v71_v51, %v72_v35  ;;  %v93_v53 = vrot.slane %v1195_v60, 7 }
  0x47   :  { %879 = vmatprep.subr.bf16.mxu0 %v878_v41  ;;  %818 = vmatprep.mubr.f32.mxu1 %v83_v2  ;;  %107 = vst [vmem:[#allocation2 + $0x58] sm:$0x7f] %v102_v63  ;;  %v133_v8 = vld [vmem:[#allocation6 + $0x68] sm:$0xff]  ;;  %v151_v10 = vld [vmem:[#allocation6 + $0xf8] sm:$0xff]  ;;  %v918_v11 = vpack.c.bf16 %v165_v5, %v164_v4  ;;  %v134_v13 = vld [vmem:[#allocation6 + $0x70] sm:$0xff]  ;;  %v103_v43 = vsel %vm80_vm0, %v101_v33, %v102_v63 }
  0x48   :  { %v888_v12 = vpack.c.bf16 %v133_v8, %v132_v7  ;;  %v166_v14 = vld [vmem:[#allocation6 + $0x170] sm:$0xff]  ;;  %v167_v15 = vld [vmem:[#allocation6 + $0x178] sm:$0xff]  ;;  %v890_v16 = vpack.c.bf16 %v151_v10, %v150_v9  ;;  %v417_v19 = vld [vmem:[#allocation8 + $0x80] sm:$0xff]  ;;  %v94_v51 = vsel %vm70_vm1, %v92_v59, %v93_v53 }
  0x49   :  { %909 = vmatpush3.bf16.msra.mxu1 %v906_v37  ;;  %v135_v17 = vld [vmem:[#allocation6 + $0x78] sm:$0xff]  ;;  %v418_v22 = vld [vmem:[#allocation8 + $0x88] sm:$0xff]  ;;  %v922_v23 = vpack.c.bf16 %v167_v15, %v166_v14  ;;  %v433_v26 = vld [vmem:[#allocation8 + $0x100] sm:$0xff] }
  0x4a   :  { %911 = vmatprep.subr.bf16.mxu1 %v910_v46  ;;  %881 = vmatpush3.bf16.msra.mxu0 %v880_v49  ;;  %v892_v25 = vpack.c.bf16 %v135_v17, %v134_v13  ;;  %v434_v27 = vld [vmem:[#allocation8 + $0x108] sm:$0xff]  ;;  %v926_v28 = vpack.c.bf16 %v418_v22, %v417_v19  ;;  %v401_v29 = vld [vmem:[#allocation8] sm:$0xff]  ;;  %v419_v31 = vld [vmem:[#allocation8 + $0x90] sm:$0xff] }
  0x4b   :  { %883 = vmatprep.subr.bf16.mxu0 %v882_v55  ;;  %v402_v30 = vld [vmem:[#allocation8 + $0x8] sm:$0xff]  ;;  %v420_v32 = vld [vmem:[#allocation8 + $0x98] sm:$0xff]  ;;  %v958_v34 = vpack.c.bf16 %v434_v27, %v433_v26  ;;  %v435_v37 = vld [vmem:[#allocation8 + $0x110] sm:$0xff] }
  0x4c   :  { %v108_v18 = vld [vmem:[#allocation2] sm:$0xff]  ;;  %v113_v20 = vld [vmem:[#allocation2 + $0x28] sm:$0xff]  ;;  %v928_v36 = vpack.c.bf16 %v402_v30, %v401_v29  ;;  %v436_v38 = vld [vmem:[#allocation8 + $0x118] sm:$0xff] }
  0x4d   :  { %913 = vmatpush3.bf16.msra.mxu1 %v910_v46  ;;  %349 = vst [vmem:[#allocation2] sm:$0x1] %v1096_v0  ;;  %v114_v21 = vld [vmem:[#allocation2 + $0x30] sm:$0xff]  ;;  %350 = vst [vmem:[#allocation2 + $0x2f] sm:$0x1] %v1096_v0  ;;  %v404_v40 = vld [vmem:[#allocation8 + $0x18] sm:$0xff]  ;;  %v962_v44 = vpack.c.bf16 %v436_v38, %v435_v37 }
  0x4e   :  { %915 = vmatprep.subr.bf16.mxu1 %v914_v1  ;;  %885 = vmatpush3.bf16.msra.mxu0 %v884_v3  ;;  %369 = vst [vmem:[#allocation2 + $0x30] sm:$0x1] %v1096_v0  ;;  %v119_v24 = vld [vmem:[#allocation2 + $0x58] sm:$0xff]  ;;  %v403_v39 = vld [vmem:[#allocation8 + $0x10] sm:$0xff]  ;;  %v421_v41 = vld [vmem:[#allocation8 + $0xa0] sm:$0xff] }
  0x4f   :  { %887 = vmatprep.subr.bf16.mxu0 %v886_v6  ;;  %370 = vst [vmem:[#allocation2 + $0x5f] sm:$0x1] %v1096_v0  ;;  %v930_v0 = vpack.c.bf16 %v420_v32, %v419_v31  ;;  %v422_v42 = vld [vmem:[#allocation8 + $0xa8] sm:$0xff]  ;;  %v932_v46 = vpack.c.bf16 %v404_v40, %v403_v39  ;;  %v405_v49 = vld [vmem:[#allocation8 + $0x20] sm:$0xff]  ;;  %v423_v56 = vld [vmem:[#allocation8 + $0xb0] sm:$0xff] }
  0x50   :  { %v934_v47 = vpack.c.bf16 %v422_v42, %v421_v41  ;;  %v406_v50 = vld [vmem:[#allocation8 + $0x28] sm:$0xff]  ;;  %v424_v57 = vld [vmem:[#allocation8 + $0xb8] sm:$0xff]  ;;  %v437_v58 = vld [vmem:[#allocation8 + $0x120] sm:$0xff] }
  0x51   :  { %917 = vmatpush3.bf16.msra.mxu1 %v914_v1  ;;  %v936_v55 = vpack.c.bf16 %v406_v50, %v405_v49  ;;  %v938_v61 = vpack.c.bf16 %v424_v57, %v423_v56  ;;  %v407_v62 = vld [vmem:[#allocation8 + $0x30] sm:$0xff]  ;;  %v408_v63 = vld [vmem:[#allocation8 + $0x38] sm:$0xff]  ;;  %v438_v1 = vld [vmem:[#allocation8 + $0x128] sm:$0xff] }
  0x52   :  { %919 = vmatprep.subr.bf16.mxu1 %v918_v11  ;;  %889 = vmatpush3.bf16.msra.mxu0 %v888_v12  ;;  %v940_v2 = vpack.c.bf16 %v408_v63, %v407_v62  ;;  %v966_v3 = vpack.c.bf16 %v438_v1, %v437_v58  ;;  %v425_v4 = vld [vmem:[#allocation8 + $0xc0] sm:$0xff]  ;;  %v426_v5 = vld [vmem:[#allocation8 + $0xc8] sm:$0xff]  ;;  %v439_v6 = vld [vmem:[#allocation8 + $0x130] sm:$0xff] }
  0x53   :  { %891 = vmatprep.subr.bf16.mxu0 %v890_v16  ;;  %v942_v7 = vpack.c.bf16 %v426_v5, %v425_v4  ;;  %v409_v59 = vld [vmem:[#allocation8 + $0x40] sm:$0xff]  ;;  %v410_v8 = vld [vmem:[#allocation8 + $0x48] sm:$0xff]  ;;  %v440_v9 = vld [vmem:[#allocation8 + $0x138] sm:$0xff] }
  0x54   :  { %v944_v10 = vpack.c.bf16 %v410_v8, %v409_v59  ;;  %v427_v12 = vld [vmem:[#allocation8 + $0xd0] sm:$0xff]  ;;  %v428_v13 = vld [vmem:[#allocation8 + $0xd8] sm:$0xff]  ;;  %v441_v14 = vld [vmem:[#allocation8 + $0x140] sm:$0xff] }
  0x55   :  { %921 = vmatpush3.bf16.msra.mxu1 %v918_v11  ;;  %v970_v11 = vpack.c.bf16 %v440_v9, %v439_v6  ;;  %v946_v15 = vpack.c.bf16 %v428_v13, %v427_v12  ;;  %v411_v16 = vld [vmem:[#allocation8 + $0x50] sm:$0xff]  ;;  %v412_v17 = vld [vmem:[#allocation8 + $0x58] sm:$0xff]  ;;  %v430_v22 = vld [vmem:[#allocation8 + $0xe8] sm:$0xff] }
  0x56   :  { %923 = vmatprep.subr.bf16.mxu1 %v922_v23  ;;  %893 = vmatpush3.bf16.msra.mxu0 %v892_v25  ;;  %v948_v19 = vpack.c.bf16 %v412_v17, %v411_v16  ;;  %v413_v25 = vld [vmem:[#allocation8 + $0x60] sm:$0xff]  ;;  %v414_v26 = vld [vmem:[#allocation8 + $0x68] sm:$0xff]  ;;  %v444_v27 = vld [vmem:[#allocation8 + $0x158] sm:$0xff] }
  0x57   :  { %927 = vmatprep.subr.bf16.mxu0 %v926_v28  ;;  %v952_v28 = vpack.c.bf16 %v414_v26, %v413_v25  ;;  %v431_v30 = vld [vmem:[#allocation8 + $0xf0] sm:$0xff]  ;;  %v432_v31 = vld [vmem:[#allocation8 + $0xf8] sm:$0xff]  ;;  %v445_v32 = vld [vmem:[#allocation8 + $0x160] sm:$0xff] }
  0x58   :  { %v954_v33 = vpack.c.bf16 %v432_v31, %v431_v30  ;;  %v416_v35 = vld [vmem:[#allocation8 + $0x78] sm:$0xff] }
  0x59   :  { %925 = vmatpush3.bf16.msra.mxu1 %v922_v23  ;;  %240 = vmatmul.mubr.f32.vlgmr.msra.gmra.mrb[0].mxu0 %v108_v18  ;;  %v442_v18 = vld [vmem:[#allocation8 + $0x148] sm:$0xff]  ;;  %v443_v23 = vld [vmem:[#allocation8 + $0x150] sm:$0xff]  ;;  %v448_v39 = vld [vmem:[#allocation8 + $0x178] sm:$0xff] }
  0x5a   :  { %959 = vmatprep.subr.bf16.mxu1 %v958_v34  ;;  %244 = vmatprep.mubr.f32.mxu0 %v1188_v52  ;;  %v978_v29 = vpack.c.bf16 %v444_v27, %v443_v23 }
  0x5b   :  { %929 = vmatpush3.bf16.msra.mxu0 %v928_v36  ;;  %v446_v36 = vld [vmem:[#allocation8 + $0x168] sm:$0xff] }
  0x5c   :  { %819 = vmatmul.mubr.f32.vlgmr.msra.gmra.mrb[0].mxu1 %v113_v20  ;;  %931 = vmatprep.subr.bf16.mxu0 %v930_v0  ;;  %v974_v20 = vpack.c.bf16 %v442_v18, %v441_v14  ;;  %v982_v38 = vpack.c.bf16 %v446_v36, %v445_v32  ;;  %v447_v0 = vld [vmem:[#allocation8 + $0x170] sm:$0xff] }
  0x5d   :  { %821 = vmatprep.mubr.f32.mxu1 %v103_v43  ;;  %961 = vmatpush3.bf16.msra.mxu1 %v958_v34  ;;  %v415_v34 = vld [vmem:[#allocation8 + $0x70] sm:$0xff]  ;;  %v986_v40 = vpack.c.bf16 %v448_v39, %v447_v0  ;;  %v656_v43 = vld [vmem:[%s1255_s2] ss:$0 sm:$0xff] }
  0x5e   :  { %245 = vmatmul.mubr.f32.gmra.mrb[2].mxu0 %v73_v45  ;;  %963 = vmatprep.subr.bf16.mxu1 %v962_v44  ;;  %v956_v37 = vpack.c.bf16 %v416_v35, %v415_v34 }
  0x5f   :  { %249 = vmatprep.mubr.f32.mxu0 %v1191_v54  ;;  %933 = vmatpush3.bf16.msra.mxu0 %v932_v46 }
  0x60   :  { %822 = vmatmul.mubr.f32.gmra.mrb[2].mxu1 %v119_v24  ;;  %935 = vmatprep.subr.bf16.mxu0 %v934_v47 }
  0x61   :  { %965 = vmatpush3.bf16.msra.mxu1 %v962_v44 }
  0x62   :  { %250 = vmatmul.mubr.f32.gmra.mrb[4].mxu0 %v114_v21  ;;  %967 = vmatprep.subr.bf16.mxu1 %v966_v3  ;;  %v429_v21 = vld [vmem:[#allocation8 + $0xe0] sm:$0xff] }
  0x63   :  { %254 = vmatprep.mubr.f32.mxu0 %v1195_v60  ;;  %937 = vmatpush3.bf16.msra.mxu0 %v936_v55  ;;  %v950_v24 = vpack.c.bf16 %v430_v22, %v429_v21 }
  0x64   :  { %939 = vmatprep.subr.bf16.mxu0 %v938_v61 }
  0x65   :  { %969 = vmatpush3.bf16.msra.mxu1 %v966_v3 }
  0x66   :  { %255 = vmatmul.mubr.f32.gmra.mrb[6].mxu0 %v94_v51  ;;  %971 = vmatprep.subr.bf16.mxu1 %v970_v11 }
  0x67   :  { %941 = vmatpush3.bf16.msra.mxu0 %v940_v2 }
  0x68   :  { %943 = vmatprep.subr.bf16.mxu0 %v942_v7 }
  0x69   :  { %973 = vmatpush3.bf16.msra.mxu1 %v970_v11 }
  0x6a   :  { %975 = vmatprep.subr.bf16.mxu1 %v974_v20 }
  0x6b   :  { %945 = vmatpush3.bf16.msra.mxu0 %v944_v10 }
  0x6c   :  { %947 = vmatprep.subr.bf16.mxu0 %v946_v15 }
  0x6d   :  { %977 = vmatpush3.bf16.msra.mxu1 %v974_v20 }
  0x6e   :  { %979 = vmatprep.subr.bf16.mxu1 %v978_v29 }
  0x6f   :  { %949 = vmatpush3.bf16.msra.mxu0 %v948_v19 }
  0x70   :  { %951 = vmatprep.subr.bf16.mxu0 %v950_v24 }
  0x71   :  { %981 = vmatpush3.bf16.msra.mxu1 %v978_v29  ;;  %v657_v29 = vld [vmem:[%s1257_s4] ss:$0 sm:$0xff]  ;;  %s1097_s4 = smov [#allocation9]  }
  0x72   :  { %983 = vmatprep.subr.bf16.mxu1 %v982_v38  ;;  %s643_s8 = sshll.u32 %s1097_s4, 4  ;;  %s644_s8 = int_to_ptr.vmem [resolvable:$true] %s643_s8 }
  0x73   :  { %953 = vmatpush3.bf16.msra.mxu0 %v952_v28  ;;  %s1063_s9 = scalar_lea.vmem %s644_s8, 512  ;;  %p1068_p11 = scmp.lt.s32.totalorder %s644_s8, %s644_s8 }
  0x74   :  { %955 = vmatprep.subr.bf16.mxu0 %v954_v33  ;;  %p1064_p10 = scmp.ne.s32.totalorder %s644_s8, %s1063_s9  ;;  %p1069_p12 = scmp.lt.s32.totalorder %s1063_s9, %s1063_s9 }
  0x75   :  { %985 = vmatpush3.bf16.msra.mxu1 %v982_v38 }
  0x76   :  { %987 = vmatprep.subr.bf16.mxu1 %v986_v40  ;;  %p1070_p13 = por %p1069_p12, %p1068_p11 }
  0x77   :  { %957 = vmatpush3.bf16.msra.mxu0 %v956_v37 }
  0x78   :  { %p1071_p0 = pnand %p1070_p13, %p1064_p10 }
  0x79   :  { %989 = vmatpush3.bf16.msra.mxu1 %v986_v40 }
 0x12c   :  { %v690_v41 = vpop.f32.mrb[0].mxu0 }
 0x12d   :  { %v691_v42 = vpop.f32.mrb[1].mxu0 }
 0x12e   :  { %v692_v44 = vadd.f32 %v691_v42, %v690_v41 }
 0x12f   :  { %v820_v45 = vpop.f32.mrb[0].mxu1 }
 0x130   :  { %v326_v46 = vpop.f32.mrb[1].mxu1  ;;  %v242_v49 = vadd.f32 %v692_v44, %v656_v43 }
 0x131   :  { %v693_v47 = vpop.f32.mrb[2].mxu0 }
 0x132   :  { %v694_v50 = vpop.f32.mrb[3].mxu0  ;;  %v327_v55 = vadd.f32 %v326_v46, %v242_v49 }
 0x133   :  { %v695_v53 = vadd.f32 %v694_v50, %v693_v47  ;;  %v823_v51 = vpop.f32.mrb[2].mxu1 }
 0x134   :  { %v336_v56 = vpop.f32.mrb[3].mxu1  ;;  %v345_v58 = vmax.f32 %v327_v55, 0.0 }
 0x135   :  { %v247_v57 = vadd.f32 %v695_v53, %v656_v43  ;;  %v696_v61 = vpop.f32.mrb[4].mxu0 }
 0x136   :  { %v697_v62 = vpop.f32.mrb[5].mxu0  ;;  %v353_v1 = vrot.slane %v345_v58, 7  ;;  %520 = vmatprep.mubr.f32.mxu0 %v345_v58  ;;  %v362_v6 = vrot.slane %v345_v58, 1 }
 0x137   :  { %v332_v63 = vadd.f32 %v820_v45, %v247_v57  ;;  %v698_v2 = vadd.f32 %v697_v62, %v696_v61 }
 0x138   :  { %358 = vst [vmem:[#allocation2] sm:$0xfe] %v353_v1 }
 0x139   :  { %v346_v3 = vmax.f32 %v332_v63, 0.0  ;;  %v699_v4 = vpop.f32.mrb[6].mxu0  ;;  %v252_v5 = vadd.f32 %v698_v2, %v656_v43 }
 0x13a   :  { %v700_v7 = vpop.f32.mrb[7].mxu0 }
 0x13b   :  { %v354_v59 = vrot.slane %v346_v3, 7  ;;  %v363_v8 = vrot.slane %v346_v3, 1  ;;  %v701_v9 = vadd.f32 %v700_v7, %v699_v4  ;;  %v337_v10 = vadd.f32 %v336_v56, %v252_v5 }
 0x13d   :  { %368 = vst [vmem:[#allocation2 + $0x28] sm:$0x7f] %v363_v8  ;;  %v355_v11 = vsel %vm70_vm1, %v353_v1, %v354_v59  ;;  %v364_v12 = vsel %vm80_vm0, %v362_v6, %v363_v8  ;;  %v257_v13 = vadd.f32 %v701_v9, %v656_v43  ;;  %v347_v14 = vmax.f32 %v337_v10, 0.0 }
 0x13e   :  { %856 = vmatprep.mubr.f32.mxu1 %v364_v12 }
 0x13f   :  { %v342_v15 = vadd.f32 %v823_v51, %v257_v13  ;;  %v373_v16 = vrot.slane %v347_v14, 7  ;;  %v389_v17 = vld [vmem:[#allocation2] sm:$0xff]  ;;  %v382_v21 = vrot.slane %v347_v14, 1 }
 0x140   :  { %521 = vmatmul.mubr.f32.vlgmr.msra.gmra.mrb[8].mxu0 %v389_v17 }
 0x141   :  { %v348_v18 = vmax.f32 %v342_v15, 0.0  ;;  %378 = vst [vmem:[#allocation2 + $0x30] sm:$0xfe] %v373_v16  ;;  %525 = vmatprep.mubr.f32.mxu0 %v346_v3 }
 0x143   :  { %v374_v19 = vrot.slane %v348_v18, 7  ;;  %v383_v20 = vrot.slane %v348_v18, 1 }
 0x144   :  { %v394_v22 = vld [vmem:[#allocation2 + $0x28] sm:$0xff]  ;;  %526 = vmatmul.mubr.f32.gmra.mrb[10].mxu0 %v355_v11 }
 0x145   :  { %388 = vst [vmem:[#allocation2 + $0x58] sm:$0x7f] %v383_v20  ;;  %v375_v23 = vsel %vm70_vm1, %v373_v16, %v374_v19  ;;  %v384_v24 = vsel %vm80_vm0, %v382_v21, %v383_v20  ;;  %857 = vmatmul.mubr.f32.vlgmr.msra.gmra.mrb[4].mxu1 %v394_v22  ;;  %530 = vmatprep.mubr.f32.mxu0 %v347_v14 }
 0x146   :  { %859 = vmatprep.mubr.f32.mxu1 %v384_v24 }
 0x148   :  { %v395_v25 = vld [vmem:[#allocation2 + $0x30] sm:$0xff] }
 0x149   :  { %531 = vmatmul.mubr.f32.gmra.mrb[12].mxu0 %v395_v25 }
 0x14a   :  { %535 = vmatprep.mubr.f32.mxu0 %v348_v18 }
 0x14c   :  { %v400_v26 = vld [vmem:[#allocation2 + $0x58] sm:$0xff] }
 0x14d   :  { %536 = vmatmul.mubr.f32.gmra.mrb[14].mxu0 %v375_v23  ;;  %860 = vmatmul.mubr.f32.gmra.mrb[6].mxu1 %v400_v26 }
 0x213   :  { %v754_v27 = vpop.f32.mrb[8].mxu0 }
 0x214   :  { %v755_v28 = vpop.f32.mrb[9].mxu0 }
 0x215   :  { %v756_v30 = vadd.f32 %v755_v28, %v754_v27 }
 0x217   :  { %v757_v31 = vpop.f32.mrb[10].mxu0  ;;  %v523_v33 = vadd.f32 %v756_v30, %v657_v29 }
 0x218   :  { %v858_v32 = vpop.f32.mrb[4].mxu1  ;;  %v758_v34 = vpop.f32.mrb[11].mxu0 }
 0x219   :  { %v607_v35 = vpop.f32.mrb[5].mxu1  ;;  %v759_v36 = vadd.f32 %v758_v34, %v757_v31 }
 0x21a   :  { %v608_v37 = vadd.f32 %v607_v35, %v523_v33 }
 0x21b   :  { %v528_v38 = vadd.f32 %v759_v36, %v657_v29 }
 0x21c   :  { %v626_v0 = vadd.f32 %v608_v37, %v1184_v48  ;;  %v760_v39 = vpop.f32.mrb[12].mxu0 }
 0x21d   :  { %v761_v40 = vpop.f32.mrb[13].mxu0  ;;  %v613_v41 = vadd.f32 %v858_v32, %v528_v38 }
 0x21e   :  { %v630_v42 = vmax.f32 %v626_v0, 0.0  ;;  %v762_v43 = vadd.f32 %v761_v40, %v760_v39 }
 0x21f   :  { %v627_v44 = vadd.f32 %v613_v41, %v1188_v52 }
 0x220   :  { %634 = vst [vmem:[#allocation9] sm:$0xff] %v630_v42  ;;  %v763_v45 = vpop.f32.mrb[14].mxu0  ;;  %v861_v46 = vpop.f32.mrb[6].mxu1  ;;  %v533_v47 = vadd.f32 %v762_v43, %v657_v29 }
 0x221   :  { %v764_v49 = vpop.f32.mrb[15].mxu0  ;;  %v617_v50 = vpop.f32.mrb[7].mxu1  ;;  %v631_v53 = vmax.f32 %v627_v44, 0.0 }
 0x222   :  { %v765_v55 = vadd.f32 %v764_v49, %v763_v45  ;;  %v618_v51 = vadd.f32 %v617_v50, %v533_v47 }
 0x223   :  { %635 = vst [vmem:[#allocation9 + $0x8] sm:$0xff] %v631_v53 }
 0x224   :  { %v538_v56 = vadd.f32 %v765_v55, %v657_v29  ;;  %v628_v48 = vadd.f32 %v618_v51, %v1191_v54 }
 0x226   :  { %v623_v57 = vadd.f32 %v861_v46, %v538_v56  ;;  %v632_v58 = vmax.f32 %v628_v48, 0.0 }
 0x228   :  { %v629_v61 = vadd.f32 %v623_v57, %v1195_v60  ;;  %636 = vst [vmem:[#allocation9 + $0x10] sm:$0xff] %v632_v58 }
 0x22a   :  { %v633_v52 = vmax.f32 %v629_v61, 0.0 }
 0x22c   :  { %637 = vst [vmem:[#allocation9 + $0x18] sm:$0xff] %v633_v52 }
 0x22d   :  { %1074 = shalt.err (!%p1071_p0)
}
 0x22e   :  { %s1075_s12 = scalar_lea.hbm %s1258_s5, 512 }
 0x22f   :  { %p1076_p1 = scmp.ne.s32.totalorder %s1258_s5, %s1075_s12  ;;  %p1079_p2 = scmp.lt.u32.totalorder %s1075_s12, %s1258_s5 }
 0x231   :  { %p1081_p3 = pnand %p1079_p2, %p1076_p1 }
 0x233   :  { %1084 = shalt.err (!%p1081_p3)
}
 0x234   :  { %649 = dma.vmem_to_hbm [thread:$0]  %s644_s8, 512, %s1258_s5, [#allocation5], %s1093_s30, %s1093_s30, %s1094_s6  }
 0x235   :  { %1089 = dma.done.wait [#allocation5], 512  }
 0x236   :  { %1090 = vsyncadd [#allocation5], 4294966784 }
 0x237   :  { %653 = vsyncpa [#allocation4], 1 }
 0x238   :  { %654 = vsyncpa [#allocation7], 1 }
 0x239   :  { %655 = vsyncpa [#allocation5], 1 }

</bundles_post_ra>
